<compile_context>
chip_gen: v6e
topology: v6e:2x2x1
jax: 0.10.0
libtpu: 0.0.40
codegen_flags: <defaults>
</compile_context>

<pallas_src>
import functools

import jax
import jax.numpy as jnp
from jax.experimental import pallas as pl
from jax.experimental.pallas import tpu as pltpu


def _round_up(v, m):
    return ((v + m - 1) // m) * m


def _vmem_capacity_bytes():
    """Query per-core VMEM; conservative fallback (v7x per-TC) if unavailable."""
    try:
        info = pltpu.get_tpu_info()
        for attr in ("vmem_capacity_bytes", "vmem_size_bytes", "vmem_bytes"):
            v = getattr(info, attr, None)
            if v:
                return int(v)
    except Exception:
        pass
    return 64 * 1024 * 1024


def _vmem_bytes(N_p, Fin_p, Fout_p, tm, tk, adj_first, feat_resident):
    """Estimate VMEM need for one kernel configuration (double-buffered inputs)."""
    BF16, F32 = 2, 4
    feat = Fin_p if adj_first else Fout_p
    adj = 2 * tm * tk * BF16
    if feat_resident:
        xs = 2 * N_p * feat * BF16          # resident x / support (conservative x2)
    else:
        xs = 2 * tk * feat * BF16
    w = 2 * Fin_p * Fout_p * BF16 if adj_first else 0
    b = 2 * Fout_p * F32
    acc = tm * feat * F32
    out = 2 * tm * Fout_p * F32
    return adj + xs + w + b + acc + out


def make_gcn_plan(N, Fin, Fout):
    """Choose padded shapes, tiles and the matmul association for one layer."""
    N_p = _round_up(N, 128)
    Fin_p = _round_up(Fin, 128)
    Fout_p = _round_up(Fout, 128)
    adj_first = Fin < Fout                   # (adj@x)@W cheaper when Fin < Fout

    budget = int(0.75 * _vmem_capacity_bytes())

    tm_cands = [t for t in (512, 256, 128) if N_p % t == 0]
    if N_p >= 256:
        # Keep grid_m >= 2 so both v7x TensorCores get row tiles.
        capped = [t for t in tm_cands if t <= N_p // 2]
        tm_cands = capped or [128]
    tk_cands = [t for t in (2048, 1024, 512, 256, 128) if N_p % t == 0]

    choice = None
    for tm in tm_cands:                      # prefer bigger tiles, resident feats
        for tk in tk_cands:
            for resident in (True, False):
                need = _vmem_bytes(N_p, Fin_p, Fout_p, tm, tk, adj_first, resident)
                if need + (4 << 20) <= budget:
                    choice = (tm, tk, resident)
                    break
            if choice:
                break
        if choice:
            break
    if choice is None:
        choice = (128, 128, False)
    tm, tk, resident = choice

    need = _vmem_bytes(N_p, Fin_p, Fout_p, tm, tk, adj_first, resident)
    vmem_limit = max(min(budget, need + (16 << 20)), need + (4 << 20))

    return dict(N=N, Fin=Fin, Fout=Fout,
                N_p=N_p, Fin_p=Fin_p, Fout_p=Fout_p,
                tm=tm, tk=tk, grid_m=N_p // tm, grid_k=N_p // tk,
                adj_first=adj_first, feat_resident=resident,
                vmem_limit=int(vmem_limit))


def prepare_adjacency(adj, plan):
    """Pad + bf16-cast adj ONCE per graph (reuse across layers / epochs) and
    build the per-(row-tile, col-tile) nonzero mask for the block-skip path."""
    N, N_p = plan["N"], plan["N_p"]
    tm, tk = plan["tm"], plan["tk"]
    adj_p = jnp.zeros((N_p, N_p), jnp.bfloat16).at[:N, :N].set(
        adj.astype(jnp.bfloat16))
    blk = adj_p.reshape(plan["grid_m"], tm, plan["grid_k"], tk)
    blk_mask = (blk != 0).any(axis=(1, 3)).astype(jnp.int32)
    return adj_p, blk_mask


# ---------------------------------------------------------------------------
# Kernels.  Grid = (row_tiles, reduction_tiles); f32 VMEM accumulator,
# output written only on the last reduction step.
# ---------------------------------------------------------------------------

def _gcn_adj_first_kernel(mask_ref, adj_ref, x_ref, w_ref, b_ref, o_ref, acc_ref,
                          *, tk, feat_resident):
    """out = ((adj @ x) @ W) + bias   (used when Fin < Fout)."""
    i = pl.program_id(0)
    k = pl.program_id(1)
    first = k == 0
    nz = mask_ref[i, k] != 0           # all-zero adjacency tile -> skip MXU work

    def contrib():
        if feat_resident:
            x_blk = x_ref[pl.ds(pl.multiple_of(k * tk, 128), tk), :]
        else:
            x_blk = x_ref[...]
        return jnp.dot(adj_ref[...], x_blk, preferred_element_type=jnp.float32)

    @pl.when(jnp.logical_and(first, jnp.logical_not(nz)))
    def _():
        acc_ref[...] = jnp.zeros_like(acc_ref)

    @pl.when(jnp.logical_and(first, nz))
    def _():
        acc_ref[...] = contrib()       # direct store: no zero-fill + re-read

    @pl.when(jnp.logical_and(jnp.logical_not(first), nz))
    def _():
        acc_ref[...] += contrib()

    @pl.when(k == pl.num_programs(1) - 1)
    def _():
        h = acc_ref[...].astype(w_ref.dtype)               # bf16 for the MXU
        out = jnp.dot(h, w_ref[...], preferred_element_type=jnp.float32)
        o_ref[...] = (out + b_ref[...]).astype(o_ref.dtype)


def _gcn_spmm_kernel(mask_ref, adj_ref, s_ref, b_ref, o_ref, acc_ref,
                     *, tk, feat_resident):
    """out = (adj @ support) + bias; support = x @ W precomputed in the wrapper."""
    i = pl.program_id(0)
    k = pl.program_id(1)
    first = k == 0
    nz = mask_ref[i, k] != 0

    def contrib():
        if feat_resident:
            s_blk = s_ref[pl.ds(pl.multiple_of(k * tk, 128), tk), :]
        else:
            s_blk = s_ref[...]
        return jnp.dot(adj_ref[...], s_blk, preferred_element_type=jnp.float32)

    @pl.when(jnp.logical_and(first, jnp.logical_not(nz)))
    def _():
        acc_ref[...] = jnp.zeros_like(acc_ref)

    @pl.when(jnp.logical_and(first, nz))
    def _():
        acc_ref[...] = contrib()

    @pl.when(jnp.logical_and(jnp.logical_not(first), nz))
    def _():
        acc_ref[...] += contrib()

    @pl.when(k == pl.num_programs(1) - 1)
    def _():
        o_ref[...] = (acc_ref[...] + b_ref[...]).astype(o_ref.dtype)


# ---------------------------------------------------------------------------
# Wrappers.
# ---------------------------------------------------------------------------

def graph_convolution_prepared(adj_p, blk_mask, x, weight, bias, plan):
    """GCN forward using an already padded/cast adjacency + block mask."""
    N, Fin, Fout = plan["N"], plan["Fin"], plan["Fout"]
    N_p, Fin_p, Fout_p = plan["N_p"], plan["Fin_p"], plan["Fout_p"]
    tm, tk = plan["tm"], plan["tk"]
    adj_first = plan["adj_first"]
    resident = plan["feat_resident"]

    x_p = jnp.zeros((N_p, Fin_p), jnp.bfloat16).at[:N, :Fin].set(
        x.astype(jnp.bfloat16))
    w_p = jnp.zeros((Fin_p, Fout_p), jnp.bfloat16).at[:Fin, :Fout].set(
        weight.astype(jnp.bfloat16))
    if bias is None:
        b_p = jnp.zeros((1, Fout_p), jnp.float32)
    else:
        b_p = jnp.zeros((1, Fout_p), jnp.float32).at[0, :Fout].set(
            bias.astype(jnp.float32))

    adj_spec = pl.BlockSpec((tm, tk), lambda i, k, m: (i, k))
    bias_spec = pl.BlockSpec((1, Fout_p), lambda i, k, m: (0, 0))
    out_spec = pl.BlockSpec((tm, Fout_p), lambda i, k, m: (i, 0))

    feat = Fin_p if adj_first else Fout_p
    if resident:
        feat_spec = pl.BlockSpec((N_p, feat), lambda i, k, m: (0, 0))
    else:
        feat_spec = pl.BlockSpec((tk, feat), lambda i, k, m: (k, 0))

    if adj_first:
        kernel = functools.partial(_gcn_adj_first_kernel, tk=tk,
                                   feat_resident=resident)
        in_specs = [adj_spec, feat_spec,
                    pl.BlockSpec((Fin_p, Fout_p), lambda i, k, m: (0, 0)),
                    bias_spec]
        operands = (blk_mask, adj_p, x_p, w_p, b_p)
        acc_shape = (tm, Fin_p)
    else:
        # support = x @ W hoisted out of the reduction loop (computed once).
        support_p = jnp.dot(x_p, w_p,
                            preferred_element_type=jnp.float32).astype(jnp.bfloat16)
        kernel = functools.partial(_gcn_spmm_kernel, tk=tk,
                                   feat_resident=resident)
        in_specs = [adj_spec, feat_spec, bias_spec]
        operands = (blk_mask, adj_p, support_p, b_p)
        acc_shape = (tm, Fout_p)

    out_p = pl.pallas_call(
        kernel,
        out_shape=jax.ShapeDtypeStruct((N_p, Fout_p), jnp.float32),
        grid_spec=pltpu.PrefetchScalarGridSpec(
            num_scalar_prefetch=1,
            grid=(plan["grid_m"], plan["grid_k"]),
            in_specs=in_specs,
            out_specs=out_spec,
            scratch_shapes=[pltpu.VMEM(acc_shape, jnp.float32)],
        ),
        compiler_params=pltpu.CompilerParams(
            dimension_semantics=("parallel", "arbitrary"),
            vmem_limit_bytes=plan["vmem_limit"],
        ),
    )(*operands)

    return out_p[:N, :Fout]


def graph_convolution(x, adj, weight, bias=None):
    """Convenience wrapper matching the PyTorch module's forward(x, adj).

    For repeated use on the same graph, hoist make_gcn_plan + prepare_adjacency
    out of the per-layer call and use graph_convolution_prepared directly.
    """
    N, Fin = x.shape
    Fout = weight.shape[1]
    assert adj.shape == (N, N)
    assert weight.shape == (Fin, Fout)
    plan = make_gcn_plan(N, Fin, Fout)
    adj_p, blk_mask = prepare_adjacency(adj, plan)
    return graph_convolution_prepared(adj_p, blk_mask, x, weight, bias, plan)


# ---------------------------------------------------------------------------
# Self-test.
# ---------------------------------------------------------------------------

def _make_inputs(key, n, fin, fout, with_bias=True):
    k_x, k_adj, k_w = jax.random.split(key, 3)
    x = jax.random.normal(k_x, (n, fin), dtype=jnp.float32)
    adj_mask = (jax.random.uniform(k_adj, (n, n)) < 0.2).astype(jnp.float32)
    adj = adj_mask + jnp.eye(n, dtype=jnp.float32)
    adj = adj / jnp.sum(adj, axis=1, keepdims=True)
    xavier_std = (2.0 / (fin + fout)) ** 0.5
    weight = xavier_std * jax.random.normal(k_w, (fin, fout), dtype=jnp.float32)
    bias = jnp.zeros((fout,), dtype=jnp.float32) if with_bias else None
    return x, adj, weight, bias


if __name__ == "__main__":
    key = jax.random.PRNGKey(0)
    k1, k2, k3, k4 = jax.random.split(key, 4)
    TOL = dict(atol=2e-2, rtol=2e-2)   # bf16 MXU operands, f32 accumulation

    # Case 1: Fin < Fout  -> (adj @ x) @ W path.
    N, Fin, Fout = 32, 16, 32
    x, adj, weight, bias = _make_inputs(k1, N, Fin, Fout, with_bias=True)
    out = jax.block_until_ready(graph_convolution(x, adj, weight, bias))
    ref = adj @ (x @ weight) + bias
    assert out.shape == (N, Fout)
    assert jnp.allclose(out, ref, **TOL), float(jnp.max(jnp.abs(out - ref)))

    # Case 2: Fin > Fout, bias=None -> adj @ (x @ W) path (support precomputed).
    N2, Fin2, Fout2 = 40, 48, 16
    x2, adj2, weight2, _ = _make_inputs(k2, N2, Fin2, Fout2, with_bias=False)
    out2 = jax.block_until_ready(graph_convolution(x2, adj2, weight2, None))
    ref2 = adj2 @ (x2 @ weight2)
    assert out2.shape == (N2, Fout2)
    assert jnp.allclose(out2, ref2, **TOL), float(jnp.max(jnp.abs(out2 - ref2)))

    # Case 3: larger graph (N_p=512 -> grid_m=2, resident features), adjacency
    # prepared ONCE and reused across two stacked GCN layers.
    N3, F0, F1, F2 = 512, 64, 96, 32
    x3, adj3, w1, b1 = _make_inputs(k3, N3, F0, F1, with_bias=True)
    xavier2 = (2.0 / (F1 + F2)) ** 0.5
    w2 = xavier2 * jax.random.normal(k4, (F1, F2), dtype=jnp.float32)

    plan1 = make_gcn_plan(N3, F0, F1)
    plan2 = make_gcn_plan(N3, F1, F2)
    adj_p, blk_mask = prepare_adjacency(adj3, plan1)          # once per graph
    if (plan2["tm"], plan2["tk"]) == (plan1["tm"], plan1["tk"]):
        adj_p2, blk_mask2 = adj_p, blk_mask                   # reuse across layers
    else:
        adj_p2, blk_mask2 = prepare_adjacency(adj3, plan2)

    h = jax.block_until_ready(
        graph_convolution_prepared(adj_p, blk_mask, x3, w1, b1, plan1))
    ref_h = adj3 @ (x3 @ w1) + b1
    assert h.shape == (N3, F1)
    assert jnp.allclose(h, ref_h, **TOL), float(jnp.max(jnp.abs(h - ref_h)))

    y = jax.block_until_ready(
        graph_convolution_prepared(adj_p2, blk_mask2, h, w2, None, plan2))
    ref_y = adj3 @ (h @ w2)
    assert y.shape == (N3, F2)
    assert jnp.allclose(y, ref_y, **TOL), float(jnp.max(jnp.abs(y - ref_y)))

    print("KERNEL_OK")
</pallas_src>

<mosaic_0001>
module attributes {stable_mosaic.version = 11 : i64} {
  func.func @_gcn_adj_first_kernel(%arg0: i32, %arg1: i32, %arg2: memref<1x1xi32, #tpu.memory_space<smem>>, %arg3: memref<128x128xbf16, #tpu.memory_space<vmem>>, %arg4: memref<128x128xbf16, #tpu.memory_space<vmem>>, %arg5: memref<128x128xbf16, #tpu.memory_space<vmem>>, %arg6: memref<1x128xf32, #tpu.memory_space<vmem>>, %arg7: memref<128x128xf32, #tpu.memory_space<vmem>>, %arg8: memref<128x128xf32, #tpu.memory_space<vmem>>) attributes {dimension_semantics = [#tpu.dimension_semantics<parallel>, #tpu.dimension_semantics<arbitrary>], iteration_bounds = array<i64: 1, 1>, scalar_prefetch = 1 : i64, scratch_operands = 1 : i64, tpu.core_type = #tpu.core_type<tc>, window_params = [{transform_indices = @transform_0, window_bounds = array<i64: 128, 128>}, {pipeline_mode = #tpu.pipeline_mode<synchronous>, transform_indices = @transform_1, window_bounds = array<i64: 128, 128>}, {pipeline_mode = #tpu.pipeline_mode<synchronous>, transform_indices = @transform_2, window_bounds = array<i64: 128, 128>}, {pipeline_mode = #tpu.pipeline_mode<synchronous>, transform_indices = @transform_3, window_bounds = array<i64: 1, 128>}, {transform_indices = @transform_4, window_bounds = array<i64: 128, 128>}]} {
    %c0_i32 = arith.constant 0 : i32
    %0 = arith.cmpi eq, %arg1, %c0_i32 : i32
    %1 = arith.index_cast %arg0 : i32 to index
    %2 = arith.index_cast %arg1 : i32 to index
    %3 = memref.load %arg2[%1, %2] : memref<1x1xi32, #tpu.memory_space<smem>>
    %c0_i32_0 = arith.constant 0 : i32
    %4 = arith.cmpi ne, %3, %c0_i32_0 : i32
    %true = arith.constant true
    %5 = arith.xori %4, %true : i1
    %6 = arith.andi %0, %5 : i1
    %7 = arith.extui %6 : i1 to i32
    %c0_i32_1 = arith.constant 0 : i32
    %8 = arith.cmpi ne, %7, %c0_i32_1 : i32
    scf.if %8 {
      %cst = arith.constant 0.000000e+00 : f32
      %19 = vector.broadcast %cst : f32 to vector<128x128xf32>
      %c0 = arith.constant 0 : index
      %c0_7 = arith.constant 0 : index
      %20 = vector.load %arg8[%c0, %c0_7] : memref<128x128xf32, #tpu.memory_space<vmem>>, vector<128x128xf32>
      tpu.vector_store %arg8[%c0, %c0_7], %19 {strides = array<i32>} : memref<128x128xf32, #tpu.memory_space<vmem>>, vector<128x128xf32>,
    } else {
    }
    %9 = arith.andi %0, %4 : i1
    %10 = arith.extui %9 : i1 to i32
    %c0_i32_2 = arith.constant 0 : i32
    %11 = arith.cmpi ne, %10, %c0_i32_2 : i32
    scf.if %11 {
      %c128_i32 = arith.constant 128 : i32
      %19 = arith.muli %arg1, %c128_i32 : i32
      %20 = tpu.assume_multiple %19, 128 : i32
      %21 = arith.index_cast %20 : i32 to index
      %c0 = arith.constant 0 : index
      %22 = vector.load %arg4[%21, %c0] : memref<128x128xbf16, #tpu.memory_space<vmem>>, vector<128x128xbf16>
      %c0_7 = arith.constant 0 : index
      %c0_8 = arith.constant 0 : index
      %23 = vector.load %arg3[%c0_7, %c0_8] : memref<128x128xbf16, #tpu.memory_space<vmem>>, vector<128x128xbf16>
      %cst = arith.constant dense<0.000000e+00> : vector<128x128xf32>
      %24 = tpu.matmul %23, %22, %cst {dimension_numbers = #tpu.dot_dimension_numbers<[1], [0], [0], [1], [0, 0, 1, 1], [], []>} : vector<128x128xbf16>, vector<128x128xbf16>, vector<128x128xf32> -> vector<128x128xf32>
      %c0_9 = arith.constant 0 : index
      %c0_10 = arith.constant 0 : index
      %25 = vector.load %arg8[%c0_9, %c0_10] : memref<128x128xf32, #tpu.memory_space<vmem>>, vector<128x128xf32>
      tpu.vector_store %arg8[%c0_9, %c0_10], %24 {strides = array<i32>} : memref<128x128xf32, #tpu.memory_space<vmem>>, vector<128x128xf32>,
    } else {
    }
    %true_3 = arith.constant true
    %12 = arith.xori %0, %true_3 : i1
    %13 = arith.andi %12, %4 : i1
    %14 = arith.extui %13 : i1 to i32
    %c0_i32_4 = arith.constant 0 : i32
    %15 = arith.cmpi ne, %14, %c0_i32_4 : i32
    scf.if %15 {
      %c0 = arith.constant 0 : index
      %c0_7 = arith.constant 0 : index
      %19 = vector.load %arg8[%c0, %c0_7] : memref<128x128xf32, #tpu.memory_space<vmem>>, vector<128x128xf32>
      %c128_i32 = arith.constant 128 : i32
      %20 = arith.muli %arg1, %c128_i32 : i32
      %21 = tpu.assume_multiple %20, 128 : i32
      %22 = arith.index_cast %21 : i32 to index
      %c0_8 = arith.constant 0 : index
      %23 = vector.load %arg4[%22, %c0_8] : memref<128x128xbf16, #tpu.memory_space<vmem>>, vector<128x128xbf16>
      %c0_9 = arith.constant 0 : index
      %c0_10 = arith.constant 0 : index
      %24 = vector.load %arg3[%c0_9, %c0_10] : memref<128x128xbf16, #tpu.memory_space<vmem>>, vector<128x128xbf16>
      %cst = arith.constant dense<0.000000e+00> : vector<128x128xf32>
      %25 = tpu.matmul %24, %23, %cst {dimension_numbers = #tpu.dot_dimension_numbers<[1], [0], [0], [1], [0, 0, 1, 1], [], []>} : vector<128x128xbf16>, vector<128x128xbf16>, vector<128x128xf32> -> vector<128x128xf32>
      %26 = arith.addf %19, %25 : vector<128x128xf32>
      %c0_11 = arith.constant 0 : index
      %c0_12 = arith.constant 0 : index
      %27 = vector.load %arg8[%c0_11, %c0_12] : memref<128x128xf32, #tpu.memory_space<vmem>>, vector<128x128xf32>
      tpu.vector_store %arg8[%c0_11, %c0_12], %26 {strides = array<i32>} : memref<128x128xf32, #tpu.memory_space<vmem>>, vector<128x128xf32>,
    } else {
    }
    %c0_i32_5 = arith.constant 0 : i32
    %16 = arith.cmpi eq, %arg1, %c0_i32_5 : i32
    %17 = arith.extui %16 : i1 to i32
    %c0_i32_6 = arith.constant 0 : i32
    %18 = arith.cmpi ne, %17, %c0_i32_6 : i32
    scf.if %18 {
      %c0 = arith.constant 0 : index
      %c0_7 = arith.constant 0 : index
      %19 = vector.load %arg8[%c0, %c0_7] : memref<128x128xf32, #tpu.memory_space<vmem>>, vector<128x128xf32>
      %20 = arith.truncf %19 : vector<128x128xf32> to vector<128x128xbf16>
      %c0_8 = arith.constant 0 : index
      %c0_9 = arith.constant 0 : index
      %21 = vector.load %arg5[%c0_8, %c0_9] : memref<128x128xbf16, #tpu.memory_space<vmem>>, vector<128x128xbf16>
      %cst = arith.constant dense<0.000000e+00> : vector<128x128xf32>
      %22 = tpu.matmul %20, %21, %cst {dimension_numbers = #tpu.dot_dimension_numbers<[1], [0], [0], [1], [0, 0, 1, 1], [], []>} : vector<128x128xbf16>, vector<128x128xbf16>, vector<128x128xf32> -> vector<128x128xf32>
      %c0_10 = arith.constant 0 : index
      %c0_11 = arith.constant 0 : index
      %23 = vector.load %arg6[%c0_10, %c0_11] : memref<1x128xf32, #tpu.memory_space<vmem>>, vector<1x128xf32>
      %24 = vector.broadcast %23 : vector<1x128xf32> to vector<128x128xf32>
      %25 = arith.addf %22, %24 : vector<128x128xf32>
      %c0_12 = arith.constant 0 : index
      %c0_13 = arith.constant 0 : index
      %26 = vector.load %arg7[%c0_12, %c0_13] : memref<128x128xf32, #tpu.memory_space<vmem>>, vector<128x128xf32>
      tpu.vector_store %arg7[%c0_12, %c0_13], %25 {strides = array<i32>} : memref<128x128xf32, #tpu.memory_space<vmem>>, vector<128x128xf32>,
    } else {
    }
    return
  }
  func.func @transform_0(%arg0: i32, %arg1: i32, %arg2: memref<1x1xi32, #tpu.memory_space<smem>>) -> (i32, i32) {
    %c0_i32 = arith.constant 0 : i32
    return %arg0, %arg1 : i32, i32
  }
  func.func @transform_1(%arg0: i32, %arg1: i32, %arg2: memref<1x1xi32, #tpu.memory_space<smem>>) -> (i32, i32) {
    %c0_i32 = arith.constant 0 : i32
    %c0_i32_0 = arith.constant 0 : i32
    %c0_i32_1 = arith.constant 0 : i32
    return %c0_i32, %c0_i32_0 : i32, i32
  }
  func.func @transform_2(%arg0: i32, %arg1: i32, %arg2: memref<1x1xi32, #tpu.memory_space<smem>>) -> (i32, i32) {
    %c0_i32 = arith.constant 0 : i32
    %c0_i32_0 = arith.constant 0 : i32
    %c0_i32_1 = arith.constant 0 : i32
    return %c0_i32, %c0_i32_0 : i32, i32
  }
  func.func @transform_3(%arg0: i32, %arg1: i32, %arg2: memref<1x1xi32, #tpu.memory_space<smem>>) -> (i32, i32) {
    %c0_i32 = arith.constant 0 : i32
    %c0_i32_0 = arith.constant 0 : i32
    %c0_i32_1 = arith.constant 0 : i32
    return %c0_i32, %c0_i32_0 : i32, i32
  }
  func.func @transform_4(%arg0: i32, %arg1: i32, %arg2: memref<1x1xi32, #tpu.memory_space<smem>>) -> (i32, i32) {
    %c0_i32 = arith.constant 0 : i32
    %c0_i32_0 = arith.constant 0 : i32
    return %arg0, %c0_i32 : i32, i32
  }
}

</mosaic_0001>

<bundles_post_ra>
// kernel: tpu_custom_call.1
= control target key start
LH: loop header
LB: loop body
LE: loop exit
PB: predicated region body
PF: predicated region fallthrough
CT: control target
= control target key end

     0   :  { %11 = vsyncpa [#allocation6], 0  ;;  %s1211_s0 = inlined_call_operand.<no memory space> [shape: s32[1,1], index: 0, kind: input, shape index: {}]   ;;  %s1212_s1 = inlined_call_operand.hbm [shape: bf16[128,128], index: 1, kind: input, shape index: {}]   ;;  %s1213_s2 = inlined_call_operand.hbm [shape: bf16[128,128], index: 2, kind: input, shape index: {}]   ;;  %s1214_s3 = inlined_call_operand.hbm [shape: bf16[128,128], index: 3, kind: input, shape index: {}]   ;;  %s1215_s4 = inlined_call_operand.vmem [shape: f32[1,128], index: 4, kind: input, shape index: {}]   ;;  %s1216_s5 = inlined_call_operand.hbm [shape: f32[128,128], index: 5, kind: output, shape index: {}]  }
   0x1   :  { %12 = vsyncpa [#allocation9], 0 }
   0x2   :  { %13 = vsyncpa [#allocation7], 0  ;;  %s1147_s18 = smov [#allocation8]   ;;  %s1148_s20 = smov [#allocation5]  }
   0x3   :  { %s31_s19 = sshll.u32 %s1147_s18, 4  ;;  %s19_s21 = sshll.u32 %s1148_s20, 4  ;;  %s32_s19 = int_to_ptr.vmem [resolvable:$true] %s31_s19  ;;  %s20_s21 = int_to_ptr.vmem [resolvable:$true] %s19_s21 }
   0x4   :  { %s1069_s22 = scalar_lea.vmem %s32_s19, 1024  ;;  %p1074_p1 = scmp.lt.s32.totalorder %s32_s19, %s32_s19 }
   0x5   :  { %p1070_p0 = scmp.ne.s32.totalorder %s32_s19, %s1069_s22  ;;  %p1075_p2 = scmp.lt.s32.totalorder %s1069_s22, %s1069_s22 }
   0x7   :  { %p1076_p3 = por %p1075_p2, %p1074_p1 }
   0x9   :  { %p1077_p4 = pnand %p1076_p3, %p1070_p0 }
   0xb   :  { %1080 = shalt.err (!%p1077_p4)
}
   0xc   :  { %s1149_s23 = smov 64   ;;  %s1150_s24 = smov 4  }
   0xd   :  { %37 = dma.hbm_to_vmem [thread:$0]  %s1213_s2, 1024, %s32_s19, [#allocation9], %s1149_s23, %s1149_s23, %s1150_s24  }
   0xe   :  { %s1089_s27 = scalar_lea.vmem %s20_s21, 1024  ;;  %p1094_p6 = scmp.lt.s32.totalorder %s20_s21, %s20_s21 }
   0xf   :  { %p1090_p5 = scmp.ne.s32.totalorder %s20_s21, %s1089_s27  ;;  %p1095_p7 = scmp.lt.s32.totalorder %s1089_s27, %s1089_s27 }
  0x11   :  { %p1096_p8 = por %p1095_p7, %p1094_p6 }
  0x13   :  { %p1097_p9 = pnand %p1096_p8, %p1090_p5 }
  0x15   :  { %1100 = shalt.err (!%p1097_p9)
}
  0x16   :  { %25 = dma.hbm_to_vmem [thread:$0]  %s1212_s1, 1024, %s20_s21, [#allocation6], %s1149_s23, %s1149_s23, %s1150_s24  }
  0x17   :  { %s1151_s30 = smov [#allocation10]  }
  0x18   :  { %s43_s6 = sshll.u32 %s1151_s30, 4  ;;  %s44_s6 = int_to_ptr.vmem [resolvable:$true] %s43_s6 }
  0x19   :  { %s1109_s7 = scalar_lea.vmem %s44_s6, 1024  ;;  %p1114_p11 = scmp.lt.s32.totalorder %s44_s6, %s44_s6 }
  0x1a   :  { %p1110_p10 = scmp.ne.s32.totalorder %s44_s6, %s1109_s7  ;;  %p1115_p12 = scmp.lt.s32.totalorder %s1109_s7, %s1109_s7 }
  0x1c   :  { %p1116_p13 = por %p1115_p12, %p1114_p11 }
  0x1e   :  { %p1117_p0 = pnand %p1116_p13, %p1110_p10 }
  0x20   :  { %1120 = shalt.err (!%p1117_p0)
}
  0x21   :  { %49 = dma.hbm_to_vmem [thread:$0]  %s1214_s3, 1024, %s44_s6, [#allocation9], %s1149_s23, %s1149_s23, %s1150_s24  }
  0x22   :  { %1141 = dma.done.wait [#allocation6], 1024  }
  0x23   :  { %1142 = vsyncadd [#allocation6], 4294966272 }
  0x24   :  { %1143 = dma.done.wait [#allocation9], 2048  }
  0x25   :  { %1144 = vsyncadd [#allocation9], 4294965248  ;;  %p67_p1 = scmp.ne.s32.totalorder %s1211_s0, 0  ;;  %p68_p2 = scmp.eq.s32.totalorder %s1211_s0, 0 }
  0x26   :  { %v1152_v0 = vmov (%p68_p2), 0.0  }
  0x27   :  { %72 = sbr.rel (!%p68_p2) target bundleno = 47 (0x2f), region = 33  ;;  %73 = vst [vmem:[#allocation2 + $0x30] sm:$0xff] (%p68_p2), %v1152_v0  ;;  %74 = vst [vmem:[#allocation2] sm:$0xff] (%p68_p2), %v1152_v0 }
  0x28   :  { %75 = vst [vmem:[#allocation2 + $0x58] sm:$0xff] (%p68_p2), %v1152_v0  ;;  %76 = vst [vmem:[#allocation2 + $0x18] sm:$0xff] (%p68_p2), %v1152_v0 }
  0x29   :  { %77 = vst [vmem:[#allocation2 + $0x50] sm:$0xff] (%p68_p2), %v1152_v0  ;;  %78 = vst [vmem:[#allocation2 + $0x68] sm:$0xff] (%p68_p2), %v1152_v0 }
  0x2a   :  { %79 = vst [vmem:[#allocation2 + $0x8] sm:$0xff] (%p68_p2), %v1152_v0  ;;  %80 = vst [vmem:[#allocation2 + $0x48] sm:$0xff] (%p68_p2), %v1152_v0 }
  0x2b   :  { %81 = vst [vmem:[#allocation2 + $0x40] sm:$0xff] (%p68_p2), %v1152_v0  ;;  %82 = vst [vmem:[#allocation2 + $0x20] sm:$0xff] (%p68_p2), %v1152_v0 }
  0x2c   :  { %83 = vst [vmem:[#allocation2 + $0x10] sm:$0xff] %v1152_v0  ;;  %84 = vst [vmem:[#allocation2 + $0x38] sm:$0xff] %v1152_v0 }
  0x2d   :  { %85 = vst [vmem:[#allocation2 + $0x60] sm:$0xff] %v1152_v0  ;;  %86 = vst [vmem:[#allocation2 + $0x70] sm:$0xff] %v1152_v0 }
  0x2e   :  { %87 = vst [vmem:[#allocation2 + $0x78] sm:$0xff] %v1152_v0  ;;  %88 = vst [vmem:[#allocation2 + $0x28] sm:$0xff] %v1152_v0 }
  0x2f PF:  { %92 = sbr.rel (!%p67_p1) target bundleno = 288 (0x120), region = 37  ;;  %v1037_v1 = vld [vmem:[#allocation8 + $0x38] sm:$0xff] (%p67_p1)   ;;  %v1038_v2 = vld [vmem:[#allocation8 + $0x30] sm:$0xff] (%p67_p1)   ;;  %v1039_v3 = vld [vmem:[#allocation8 + $0x28] sm:$0xff] (%p67_p1)  }
  0x30   :  { %932 = vmatprep.subr.bf16.mxu0 (%p67_p1), %v1037_v1  ;;  %996 = vmatprep.subr.bf16.mxu1 (%p67_p1), %v1037_v1  ;;  %v1040_v4 = vld [vmem:[#allocation8 + $0x20] sm:$0xff] (%p67_p1)   ;;  %v1041_v7 = vld [vmem:[#allocation8 + $0x18] sm:$0xff] (%p67_p1)   ;;  %v1042_v8 = vld [vmem:[#allocation8 + $0x10] sm:$0xff] (%p67_p1)  }
  0x31   :  { %933 = vmatpush3.bf16.msra.mxu0 (%p67_p1), %v1037_v1  ;;  %1004 = vmatpush3.bf16.msra.mxu1 (%p67_p1), %v1037_v1  ;;  %v1045_v5 = vld [vmem:[#allocation5] sm:$0xff] (%p67_p1)   ;;  %v1043_v9 = vld [vmem:[#allocation8 + $0x8] sm:$0xff] (%p67_p1)   ;;  %v1049_v13 = vld [vmem:[#allocation5 + $0x10] sm:$0xff] (%p67_p1)  }
  0x32   :  { %934 = vmatprep.subr.bf16.mxu0 (%p67_p1), %v1038_v2  ;;  %997 = vmatprep.subr.bf16.mxu1 (%p67_p1), %v1038_v2  ;;  %v1046_v6 = vld [vmem:[#allocation5 + $0x20] sm:$0xff] (%p67_p1)   ;;  %v1047_v11 = vld [vmem:[#allocation5 + $0x8] sm:$0xff] (%p67_p1)   ;;  %v1050_v14 = vld [vmem:[#allocation5 + $0x30] sm:$0xff] (%p67_p1)  }
  0x33   :  { %948 = vmatprep.mubr.bf16.mxu0 (%p67_p1), %v1045_v5  ;;  %956 = vmatprep.mubr.bf16.mxu1 (%p67_p1), %v1046_v6  ;;  %v1044_v10 = vld [vmem:[#allocation8] sm:$0xff] (%p67_p1)   ;;  %v1048_v12 = vld [vmem:[#allocation5 + $0x28] sm:$0xff] (%p67_p1)   ;;  %v1051_v15 = vld [vmem:[#allocation5 + $0x18] sm:$0xff] (%p67_p1)  }
  0x34   :  { %v1052_v16 = vld [vmem:[#allocation5 + $0x38] sm:$0xff]  }
  0x35   :  { %935 = vmatpush3.bf16.msra.mxu0 %v1038_v2  ;;  %1005 = vmatpush3.bf16.msra.mxu1 %v1038_v2 }
  0x36   :  { %936 = vmatprep.subr.bf16.mxu0 %v1039_v3  ;;  %998 = vmatprep.subr.bf16.mxu1 %v1039_v3 }
  0x39   :  { %937 = vmatpush3.bf16.msra.mxu0 %v1039_v3  ;;  %1006 = vmatpush3.bf16.msra.mxu1 %v1039_v3 }
  0x3a   :  { %938 = vmatprep.subr.bf16.mxu0 %v1040_v4  ;;  %999 = vmatprep.subr.bf16.mxu1 %v1040_v4 }
  0x3d   :  { %939 = vmatpush3.bf16.msra.mxu0 %v1040_v4  ;;  %1007 = vmatpush3.bf16.msra.mxu1 %v1040_v4 }
  0x3e   :  { %940 = vmatprep.subr.bf16.mxu0 %v1041_v7  ;;  %1000 = vmatprep.subr.bf16.mxu1 %v1041_v7 }
  0x41   :  { %941 = vmatpush3.bf16.msra.mxu0 %v1041_v7  ;;  %1008 = vmatpush3.bf16.msra.mxu1 %v1041_v7 }
  0x42   :  { %942 = vmatprep.subr.bf16.mxu0 %v1042_v8  ;;  %1001 = vmatprep.subr.bf16.mxu1 %v1042_v8 }
  0x45   :  { %943 = vmatpush3.bf16.msra.mxu0 %v1042_v8  ;;  %1009 = vmatpush3.bf16.msra.mxu1 %v1042_v8 }
  0x46   :  { %944 = vmatprep.subr.bf16.mxu0 %v1043_v9  ;;  %1002 = vmatprep.subr.bf16.mxu1 %v1043_v9 }
  0x49   :  { %945 = vmatpush3.bf16.msra.mxu0 %v1043_v9  ;;  %1010 = vmatpush3.bf16.msra.mxu1 %v1043_v9 }
  0x4a   :  { %946 = vmatprep.subr.bf16.mxu0 %v1044_v10  ;;  %1003 = vmatprep.subr.bf16.mxu1 %v1044_v10 }
  0x4d   :  { %947 = vmatpush3.bf16.msra.mxu0 %v1044_v10  ;;  %1011 = vmatpush3.bf16.msra.mxu1 %v1044_v10 }
  0x50   :  { %949 = vmatmul.mubr.bf16.vlgmr.msra.gmra.mxu0 %v1047_v11  ;;  %957 = vmatmul.mubr.bf16.vlgmr.msra.gmra.mxu1 %v1048_v12 }
  0x51   :  { %952 = vmatprep.mubr.bf16.mxu0 %v1049_v13  ;;  %960 = vmatprep.mubr.bf16.mxu1 %v1050_v14 }
  0x58   :  { %953 = vmatmul.mubr.bf16.gmra.mxu0 %v1051_v15  ;;  %961 = vmatmul.mubr.bf16.gmra.mxu1 %v1052_v16 }
 0x110   :  { %v950_v17 = vpop.f32.mrf.mxu0  ;;  %v958_v18 = vpop.f32.mrf.mxu1 }
 0x111   :  { %325 = vst [vmem:[#allocation2 + $0x58] sm:$0xff] %v950_v17  ;;  %333 = vst [vmem:[#allocation2 + $0x10] sm:$0xff] %v958_v18 }
 0x112   :  { %v260_v19 = vpop.f32.mrf.mxu0  ;;  %v292_v20 = vpop.f32.mrf.mxu1 }
 0x113   :  { %323 = vst [vmem:[#allocation2 + $0x30] sm:$0xff] %v260_v19  ;;  %331 = vst [vmem:[#allocation2 + $0x40] sm:$0xff] %v292_v20 }
 0x114   :  { %v951_v21 = vpop.f32.mrf.mxu0  ;;  %v959_v22 = vpop.f32.mrf.mxu1 }
 0x115   :  { %326 = vst [vmem:[#allocation2 + $0x18] sm:$0xff] %v951_v21  ;;  %334 = vst [vmem:[#allocation2 + $0x38] sm:$0xff] %v959_v22 }
 0x116   :  { %v263_v23 = vpop.f32.mrf.mxu0  ;;  %v295_v24 = vpop.f32.mrf.mxu1 }
 0x117   :  { %324 = vst [vmem:[#allocation2] sm:$0xff] %v263_v23  ;;  %332 = vst [vmem:[#allocation2 + $0x20] sm:$0xff] %v295_v24 }
 0x118   :  { %v954_v25 = vpop.f32.mrf.mxu0  ;;  %v962_v26 = vpop.f32.mrf.mxu1 }
 0x119   :  { %329 = vst [vmem:[#allocation2 + $0x8] sm:$0xff] %v954_v25  ;;  %337 = vst [vmem:[#allocation2 + $0x78] sm:$0xff] %v962_v26 }
 0x11a   :  { %v276_v27 = vpop.f32.mrf.mxu0  ;;  %v308_v28 = vpop.f32.mrf.mxu1 }
 0x11b   :  { %327 = vst [vmem:[#allocation2 + $0x50] sm:$0xff] %v276_v27  ;;  %335 = vst [vmem:[#allocation2 + $0x60] sm:$0xff] %v308_v28 }
 0x11c   :  { %v955_v29 = vpop.f32.mrf.mxu0  ;;  %v963_v30 = vpop.f32.mrf.mxu1 }
 0x11d   :  { %330 = vst [vmem:[#allocation2 + $0x48] sm:$0xff] %v955_v29  ;;  %338 = vst [vmem:[#allocation2 + $0x28] sm:$0xff] %v963_v30 }
 0x11e   :  { %v279_v31 = vpop.f32.mrf.mxu0  ;;  %v311_v32 = vpop.f32.mrf.mxu1 }
 0x11f   :  { %328 = vst [vmem:[#allocation2 + $0x68] sm:$0xff] %v279_v31  ;;  %336 = vst [vmem:[#allocation2 + $0x70] sm:$0xff] %v311_v32 }
 0x120 PF:  { %v1053_v33 = vld [vmem:[#allocation10 + $0x38] sm:$0xff]   ;;  %v1054_v34 = vld [vmem:[#allocation10 + $0x30] sm:$0xff]   ;;  %v1055_v35 = vld [vmem:[#allocation10 + $0x28] sm:$0xff]  }
 0x121   :  { %964 = vmatprep.subr.bf16.mxu0 %v1053_v33  ;;  %1012 = vmatprep.subr.bf16.mxu1 %v1053_v33  ;;  %v1056_v36 = vld [vmem:[#allocation10 + $0x20] sm:$0xff]   ;;  %v625_v37 = vld [vmem:[#allocation2 + $0x30] sm:$0xff]  ;;  %v1057_v43 = vld [vmem:[#allocation10 + $0x18] sm:$0xff]  }
 0x122   :  { %965 = vmatpush3.bf16.msra.mxu0 %v1053_v33  ;;  %1020 = vmatpush3.bf16.msra.mxu1 %v1053_v33  ;;  %v626_v38 = vld [vmem:[#allocation2] sm:$0xff]  ;;  %v1058_v44 = vld [vmem:[#allocation10 + $0x10] sm:$0xff]   ;;  %v1059_v45 = vld [vmem:[#allocation10 + $0x8] sm:$0xff]  }
 0x123   :  { %966 = vmatprep.subr.bf16.mxu0 %v1054_v34  ;;  %1013 = vmatprep.subr.bf16.mxu1 %v1054_v34  ;;  %v633_v39 = vld [vmem:[#allocation2 + $0x40] sm:$0xff]  ;;  %v641_v40 = vpack.c.bf16 %v626_v38, %v625_v37  ;;  %v627_v47 = vld [vmem:[#allocation2 + $0x58] sm:$0xff]  ;;  %v635_v49 = vld [vmem:[#allocation2 + $0x10] sm:$0xff] }
 0x124   :  { %v634_v41 = vld [vmem:[#allocation2 + $0x20] sm:$0xff]  ;;  %v628_v48 = vld [vmem:[#allocation2 + $0x18] sm:$0xff]  ;;  %v629_v51 = vld [vmem:[#allocation2 + $0x50] sm:$0xff] }
 0x125   :  { %v645_v42 = vpack.c.bf16 %v634_v41, %v633_v39  ;;  %980 = vmatprep.mubr.bf16.mxu0 %v641_v40  ;;  %v1060_v46 = vld [vmem:[#allocation10] sm:$0xff]   ;;  %v636_v50 = vld [vmem:[#allocation2 + $0x38] sm:$0xff]  ;;  %v642_v55 = vpack.c.bf16 %v628_v48, %v627_v47  ;;  %v631_v59 = vld [vmem:[#allocation2 + $0x8] sm:$0xff] }
 0x126   :  { %967 = vmatpush3.bf16.msra.mxu0 %v1054_v34  ;;  %1021 = vmatpush3.bf16.msra.mxu1 %v1054_v34  ;;  %v630_v52 = vld [vmem:[#allocation2 + $0x68] sm:$0xff]  ;;  %v637_v53 = vld [vmem:[#allocation2 + $0x60] sm:$0xff]  ;;  %v638_v54 = vld [vmem:[#allocation2 + $0x70] sm:$0xff]  ;;  %v646_v56 = vpack.c.bf16 %v636_v50, %v635_v49 }
 0x127   :  { %968 = vmatprep.subr.bf16.mxu0 %v1055_v35  ;;  %1014 = vmatprep.subr.bf16.mxu1 %v1055_v35  ;;  %v643_v57 = vpack.c.bf16 %v630_v52, %v629_v51  ;;  %v647_v58 = vpack.c.bf16 %v638_v54, %v637_v53  ;;  %v632_v60 = vld [vmem:[#allocation2 + $0x48] sm:$0xff]  ;;  %v639_v61 = vld [vmem:[#allocation2 + $0x78] sm:$0xff]  ;;  %v889_v1 = vld [vmem:[%s1215_s4] ss:$0 sm:$0xff]  ;;  %s1153_s4 = smov [#allocation11]  }
 0x128   :  { %988 = vmatprep.mubr.bf16.mxu1 %v645_v42  ;;  %v640_v62 = vld [vmem:[#allocation2 + $0x28] sm:$0xff]  ;;  %v644_v63 = vpack.c.bf16 %v632_v60, %v631_v59  ;;  %s838_s14 = sshll.u32 %s1153_s4, 4  ;;  %s839_s14 = int_to_ptr.vmem [resolvable:$true] %s838_s14 }
 0x129   :  { %v648_v0 = vpack.c.bf16 %v640_v62, %v639_v61  ;;  %s1121_s15 = scalar_lea.vmem %s839_s14, 2048  ;;  %p1126_p4 = scmp.lt.s32.totalorder %s839_s14, %s839_s14 }
 0x12a   :  { %969 = vmatpush3.bf16.msra.mxu0 %v1055_v35  ;;  %1022 = vmatpush3.bf16.msra.mxu1 %v1055_v35  ;;  %p1122_p3 = scmp.ne.s32.totalorder %s839_s14, %s1121_s15  ;;  %p1127_p5 = scmp.lt.s32.totalorder %s1121_s15, %s1121_s15 }
 0x12b   :  { %970 = vmatprep.subr.bf16.mxu0 %v1056_v36  ;;  %1015 = vmatprep.subr.bf16.mxu1 %v1056_v36 }
 0x12c   :  { %p1128_p6 = por %p1127_p5, %p1126_p4 }
 0x12e   :  { %971 = vmatpush3.bf16.msra.mxu0 %v1056_v36  ;;  %1023 = vmatpush3.bf16.msra.mxu1 %v1056_v36  ;;  %p1129_p7 = pnand %p1128_p6, %p1122_p3 }
 0x12f   :  { %972 = vmatprep.subr.bf16.mxu0 %v1057_v43  ;;  %1016 = vmatprep.subr.bf16.mxu1 %v1057_v43 }
 0x132   :  { %973 = vmatpush3.bf16.msra.mxu0 %v1057_v43  ;;  %1024 = vmatpush3.bf16.msra.mxu1 %v1057_v43 }
 0x133   :  { %974 = vmatprep.subr.bf16.mxu0 %v1058_v44  ;;  %1017 = vmatprep.subr.bf16.mxu1 %v1058_v44 }
 0x136   :  { %975 = vmatpush3.bf16.msra.mxu0 %v1058_v44  ;;  %1025 = vmatpush3.bf16.msra.mxu1 %v1058_v44 }
 0x137   :  { %976 = vmatprep.subr.bf16.mxu0 %v1059_v45  ;;  %1018 = vmatprep.subr.bf16.mxu1 %v1059_v45 }
 0x13a   :  { %977 = vmatpush3.bf16.msra.mxu0 %v1059_v45  ;;  %1026 = vmatpush3.bf16.msra.mxu1 %v1059_v45 }
 0x13b   :  { %978 = vmatprep.subr.bf16.mxu0 %v1060_v46  ;;  %1019 = vmatprep.subr.bf16.mxu1 %v1060_v46 }
 0x13e   :  { %979 = vmatpush3.bf16.msra.mxu0 %v1060_v46  ;;  %1027 = vmatpush3.bf16.msra.mxu1 %v1060_v46 }
 0x141   :  { %981 = vmatmul.mubr.bf16.vlgmr.msra.gmra.mxu0 %v642_v55  ;;  %989 = vmatmul.mubr.bf16.vlgmr.msra.gmra.mxu1 %v646_v56 }
 0x142   :  { %984 = vmatprep.mubr.bf16.mxu0 %v643_v57  ;;  %992 = vmatprep.mubr.bf16.mxu1 %v647_v58 }
 0x149   :  { %985 = vmatmul.mubr.bf16.gmra.mxu0 %v644_v63  ;;  %993 = vmatmul.mubr.bf16.gmra.mxu1 %v648_v0 }
 0x201   :  { %v982_v2 = vpop.f32.mrf.mxu0  ;;  %v990_v3 = vpop.f32.mrf.mxu1 }
 0x202   :  { %v763_v4 = vadd.f32 %v982_v2, %v889_v1  ;;  %v795_v5 = vadd.f32 %v990_v3, %v889_v1 }
 0x203   :  { %v754_v6 = vpop.f32.mrf.mxu0  ;;  %v786_v7 = vpop.f32.mrf.mxu1 }
 0x204   :  { %819 = vst [vmem:[#allocation11 + $0x10] sm:$0xff] %v763_v4  ;;  %827 = vst [vmem:[#allocation11 + $0x50] sm:$0xff] %v795_v5  ;;  %v755_v8 = vadd.f32 %v889_v1, %v754_v6  ;;  %v787_v9 = vadd.f32 %v889_v1, %v786_v7 }
 0x205   :  { %v983_v10 = vpop.f32.mrf.mxu0  ;;  %v991_v11 = vpop.f32.mrf.mxu1 }
 0x206   :  { %817 = vst [vmem:[#allocation11] sm:$0xff] %v755_v8  ;;  %825 = vst [vmem:[#allocation11 + $0x40] sm:$0xff] %v787_v9  ;;  %v766_v12 = vadd.f32 %v983_v10, %v889_v1  ;;  %v798_v13 = vadd.f32 %v991_v11, %v889_v1 }
 0x207   :  { %v757_v14 = vpop.f32.mrf.mxu0  ;;  %v789_v15 = vpop.f32.mrf.mxu1 }
 0x208   :  { %820 = vst [vmem:[#allocation11 + $0x18] sm:$0xff] %v766_v12  ;;  %828 = vst [vmem:[#allocation11 + $0x58] sm:$0xff] %v798_v13  ;;  %v758_v16 = vadd.f32 %v889_v1, %v757_v14  ;;  %v790_v17 = vadd.f32 %v889_v1, %v789_v15 }
 0x209   :  { %v986_v18 = vpop.f32.mrf.mxu0  ;;  %v994_v19 = vpop.f32.mrf.mxu1 }
 0x20a   :  { %818 = vst [vmem:[#allocation11 + $0x8] sm:$0xff] %v758_v16  ;;  %826 = vst [vmem:[#allocation11 + $0x48] sm:$0xff] %v790_v17  ;;  %v779_v20 = vadd.f32 %v986_v18, %v889_v1  ;;  %v811_v21 = vadd.f32 %v994_v19, %v889_v1 }
 0x20b   :  { %v770_v22 = vpop.f32.mrf.mxu0  ;;  %v802_v23 = vpop.f32.mrf.mxu1 }
 0x20c   :  { %823 = vst [vmem:[#allocation11 + $0x30] sm:$0xff] %v779_v20  ;;  %831 = vst [vmem:[#allocation11 + $0x70] sm:$0xff] %v811_v21  ;;  %v771_v24 = vadd.f32 %v889_v1, %v770_v22  ;;  %v803_v25 = vadd.f32 %v889_v1, %v802_v23 }
 0x20d   :  { %v987_v26 = vpop.f32.mrf.mxu0  ;;  %v995_v27 = vpop.f32.mrf.mxu1 }
 0x20e   :  { %821 = vst [vmem:[#allocation11 + $0x20] sm:$0xff] %v771_v24  ;;  %829 = vst [vmem:[#allocation11 + $0x60] sm:$0xff] %v803_v25  ;;  %v782_v28 = vadd.f32 %v987_v26, %v889_v1  ;;  %v814_v29 = vadd.f32 %v995_v27, %v889_v1 }
 0x20f   :  { %v773_v30 = vpop.f32.mrf.mxu0  ;;  %v805_v31 = vpop.f32.mrf.mxu1 }
 0x210   :  { %824 = vst [vmem:[#allocation11 + $0x38] sm:$0xff] %v782_v28  ;;  %832 = vst [vmem:[#allocation11 + $0x78] sm:$0xff] %v814_v29  ;;  %v774_v32 = vadd.f32 %v889_v1, %v773_v30  ;;  %v806_v33 = vadd.f32 %v889_v1, %v805_v31 }
 0x212   :  { %822 = vst [vmem:[#allocation11 + $0x28] sm:$0xff] %v774_v32  ;;  %830 = vst [vmem:[#allocation11 + $0x68] sm:$0xff] %v806_v33 }
 0x213   :  { %1132 = shalt.err (!%p1129_p7)
}
 0x214   :  { %s1154_s16 = smov 128   ;;  %s1155_s17 = smov 8  }
 0x215   :  { %844 = dma.vmem_to_hbm [thread:$0]  %s839_s14, 2048, %s1216_s5, [#allocation7], %s1154_s16, %s1154_s16, %s1155_s17  }
 0x216   :  { %1145 = dma.done.wait [#allocation7], 2048  }
 0x217   :  { %1146 = vsyncadd [#allocation7], 4294965248 }
 0x218   :  { %848 = vsyncpa [#allocation6], 1 }
 0x219   :  { %849 = vsyncpa [#allocation9], 1 }
 0x21a   :  { %850 = vsyncpa [#allocation7], 1 }

</bundles_post_ra>
